<compile_context>
chip_gen: v7x
topology: tpu7x:2x2x1
jax: 0.10.0
libtpu: 0.0.40
codegen_flags: <defaults>
</compile_context>

<pallas_src>
import functools

import jax
import jax.numpy as jnp
from jax.experimental import pallas as pl
from jax.experimental.pallas import tpu as pltpu

LANE = 128     # f32 lane width
SUBLANE = 8    # f32 sublane width


def _round_up(n, m):
    return ((n + m - 1) // m) * m


# --------------------------------------------------------------------------
# Kernel
# --------------------------------------------------------------------------
def _vae_forward_kernel(x_ref, eps_ref,
                        w1_ref, b1_ref,
                        w2m_ref, b2m_ref, w2l_ref, b2l_ref,
                        w3_ref, b3_ref, w4_ref, b4_ref,
                        out_ref, mu_ref, logvar_ref):
    """Whole VAE forward (encoder -> reparameterize -> decoder) for one batch tile.

    All feature dims are pre-padded to multiples of 128 (zero-padded weights),
    so every jnp.dot is lane-aligned and every store is a full-lane store.
    """
    x = x_ref[...]

    # --- encoder layer 1 ---
    h = jnp.dot(x, w1_ref[...], preferred_element_type=jnp.float32) + b1_ref[...]
    h = jnp.maximum(h, 0.2 * h)  # LeakyReLU(0.2): mul + max (no compare/select)

    # --- encoder layer 2 (split into mu / logvar halves -> lane-aligned at col 0) ---
    mu = jnp.dot(h, w2m_ref[...], preferred_element_type=jnp.float32) + b2m_ref[...]
    logvar = jnp.dot(h, w2l_ref[...], preferred_element_type=jnp.float32) + b2l_ref[...]

    # --- reparameterize (eps supplied from outside; padded lanes of eps are 0) ---
    z = mu + jnp.exp(0.5 * logvar) * eps_ref[...]

    # --- decoder ---
    d = jnp.dot(z, w3_ref[...], preferred_element_type=jnp.float32) + b3_ref[...]
    d = jnp.maximum(d, 0.0)  # ReLU
    d2 = jnp.dot(d, w4_ref[...], preferred_element_type=jnp.float32) + b4_ref[...]

    out_ref[...] = jnp.tanh(d2)
    mu_ref[...] = mu
    logvar_ref[...] = logvar


# --------------------------------------------------------------------------
# Parameter preparation (done once, off the hot path)
# --------------------------------------------------------------------------
def pad_params(params, feature_size, h_dim, z_dim):
    """Zero-pad all weight/bias dims to lane width and split W2/b2 into mu/logvar halves."""
    w1, b1, w2, b2, w3, b3, w4, b4 = params
    FP = _round_up(feature_size, LANE)
    HP = _round_up(h_dim, LANE)
    ZP = _round_up(z_dim, LANE)

    def pad2(a, rows, cols):
        return jnp.zeros((rows, cols), a.dtype).at[:a.shape[0], :a.shape[1]].set(a)

    w1p = pad2(w1, FP, HP)
    b1p = pad2(b1, 1, HP)
    w2mp = pad2(w2[:, :z_dim], HP, ZP)
    b2mp = pad2(b2[:, :z_dim], 1, ZP)
    w2lp = pad2(w2[:, z_dim:], HP, ZP)
    b2lp = pad2(b2[:, z_dim:], 1, ZP)
    w3p = pad2(w3, ZP, HP)
    b3p = pad2(b3, 1, HP)
    w4p = pad2(w4, HP, FP)
    b4p = pad2(b4, 1, FP)
    return (w1p, b1p, w2mp, b2mp, w2lp, b2lp, w3p, b3p, w4p, b4p)


# --------------------------------------------------------------------------
# Wrapper
# --------------------------------------------------------------------------
@functools.partial(jax.jit, static_argnames=("feature_size", "z_dim", "block_batch"))
def generative_replay_forward(x, eps, padded_params, *, feature_size, z_dim,
                              block_batch=None):
    """Gridded pallas_call over the batch axis. Returns (decoded, mu, logvar)."""
    batch = x.shape[0]
    w1p, b1p, w2mp = padded_params[0], padded_params[1], padded_params[2]
    FP, HP = w1p.shape
    ZP = w2mp.shape[1]

    # Batch tile: multiple of the f32 sublane; larger tiles when batch allows
    # (amortizes the ~0.35us/step overhead and keeps DMAs big).
    if block_batch is None:
        block_batch = min(256, _round_up(batch, SUBLANE))
    TB = _round_up(block_batch, SUBLANE)
    BP = _round_up(batch, TB)
    grid = (BP // TB,)

    # Zero-pad activations to (BP, lane-padded features). Padded lanes/rows
    # contribute exact zeros through every layer, so valid lanes are unaffected.
    xp = jnp.zeros((BP, FP), jnp.float32).at[:batch, :feature_size].set(x)
    epsp = jnp.zeros((BP, ZP), jnp.float32).at[:batch, :z_dim].set(eps)

    # Batch-tiled specs (pipelined / megacore-sharded along the batch grid axis).
    x_spec = pl.BlockSpec((TB, FP), lambda i: (i, 0))
    z_spec = pl.BlockSpec((TB, ZP), lambda i: (i, 0))

    # Weights/biases: full-array blocks with a constant index_map -> fetched
    # once and kept VMEM-resident across grid steps.
    def const_spec(shape):
        return pl.BlockSpec(shape, lambda i: (0, 0))

    in_specs = [x_spec, z_spec] + [const_spec(p.shape) for p in padded_params]
    out_specs = (x_spec, z_spec, z_spec)
    out_shapes = (
        jax.ShapeDtypeStruct((BP, FP), jnp.float32),  # decoded (lane-padded)
        jax.ShapeDtypeStruct((BP, ZP), jnp.float32),  # mu      (lane-padded)
        jax.ShapeDtypeStruct((BP, ZP), jnp.float32),  # logvar  (lane-padded)
    )

    out_p, mu_p, logvar_p = pl.pallas_call(
        _vae_forward_kernel,
        out_shape=out_shapes,
        grid=grid,
        in_specs=in_specs,
        out_specs=out_specs,
        compiler_params=pltpu.CompilerParams(
            dimension_semantics=("parallel",),
        ),
    )(xp, epsp, *padded_params)

    # Strip padding back to the module's logical shapes.
    return (out_p[:batch, :feature_size],
            mu_p[:batch, :z_dim],
            logvar_p[:batch, :z_dim])


# --------------------------------------------------------------------------
# Init + pure-JAX reference
# --------------------------------------------------------------------------
def init_params(key, feature_size, h_dim, z_dim):
    """Deterministic PyTorch-style Linear init: U(-1/sqrt(fan_in), 1/sqrt(fan_in))."""
    def linear(k, fan_in, fan_out):
        kw, kb = jax.random.split(k)
        bound = 1.0 / jnp.sqrt(fan_in)
        w = jax.random.uniform(kw, (fan_in, fan_out), jnp.float32, -bound, bound)
        b = jax.random.uniform(kb, (1, fan_out), jnp.float32, -bound, bound)
        return w, b

    k1, k2, k3, k4 = jax.random.split(key, 4)
    w1, b1 = linear(k1, feature_size, h_dim)      # encoder L1
    w2, b2 = linear(k2, h_dim, 2 * z_dim)         # encoder L2
    w3, b3 = linear(k3, z_dim, h_dim)             # decoder L1
    w4, b4 = linear(k4, h_dim, feature_size)      # decoder L2
    return (w1, b1, w2, b2, w3, b3, w4, b4)


def reference_forward(x, eps, params):
    """Pure-JAX reference for correctness check (unpadded)."""
    w1, b1, w2, b2, w3, b3, w4, b4 = params
    h = x @ w1 + b1
    h = jnp.where(h > 0.0, h, 0.2 * h)
    h2 = h @ w2 + b2
    z_dim = w3.shape[0]
    mu, logvar = h2[:, :z_dim], h2[:, z_dim:]
    z = mu + jnp.exp(0.5 * logvar) * eps
    d = jnp.maximum(z @ w3 + b3, 0.0)
    out = jnp.tanh(d @ w4 + b4)
    return out, mu, logvar


if __name__ == "__main__":
    # Module hyperparameters (Pendulum-like env): action_shape=1, state_shape=3
    action_shape, state_shape = 1, 3
    feature_size = action_shape + 2 * state_shape + 2  # = 9
    h_dim, z_dim = 5, 3
    batch = 64           # small, but enough to exercise the batch grid
    block_batch = 16     # -> grid=(4,), pipelined + parallel semantics

    key = jax.random.PRNGKey(0)
    k_params, k_x, k_eps = jax.random.split(key, 3)

    params = init_params(k_params, feature_size, h_dim, z_dim)
    padded_params = pad_params(params, feature_size, h_dim, z_dim)

    x = jax.random.normal(k_x, (batch, feature_size), jnp.float32)
    # eps corresponds to torch.randn(*mu.size()) in reparameterize; generated
    # deterministically here and passed into the kernel.
    # TODO(synk): could draw eps in-kernel via pltpu.prng_seed/prng_random_bits
    # if bitwise determinism vs. the reference were not required.
    eps = jax.random.normal(k_eps, (batch, z_dim), jnp.float32)

    out, mu, logvar = generative_replay_forward(
        x, eps, padded_params,
        feature_size=feature_size, z_dim=z_dim, block_batch=block_batch)
    jax.block_until_ready((out, mu, logvar))

    ref_out, ref_mu, ref_logvar = reference_forward(x, eps, params)
    assert jnp.allclose(out, ref_out, atol=1e-5, rtol=1e-5)
    assert jnp.allclose(mu, ref_mu, atol=1e-5, rtol=1e-5)
    assert jnp.allclose(logvar, ref_logvar, atol=1e-5, rtol=1e-5)

    print("KERNEL_OK")
</pallas_src>

<mosaic_0001>
module attributes {stable_mosaic.version = 11 : i64} {
  func.func @_vae_forward_kernel(%arg0: i32, %arg1: memref<16x128xf32, #tpu.memory_space<vmem>>, %arg2: memref<16x128xf32, #tpu.memory_space<vmem>>, %arg3: memref<128x128xf32, #tpu.memory_space<vmem>>, %arg4: memref<1x128xf32, #tpu.memory_space<vmem>>, %arg5: memref<128x128xf32, #tpu.memory_space<vmem>>, %arg6: memref<1x128xf32, #tpu.memory_space<vmem>>, %arg7: memref<128x128xf32, #tpu.memory_space<vmem>>, %arg8: memref<1x128xf32, #tpu.memory_space<vmem>>, %arg9: memref<128x128xf32, #tpu.memory_space<vmem>>, %arg10: memref<1x128xf32, #tpu.memory_space<vmem>>, %arg11: memref<128x128xf32, #tpu.memory_space<vmem>>, %arg12: memref<1x128xf32, #tpu.memory_space<vmem>>, %arg13: memref<16x128xf32, #tpu.memory_space<vmem>>, %arg14: memref<16x128xf32, #tpu.memory_space<vmem>>, %arg15: memref<16x128xf32, #tpu.memory_space<vmem>>) attributes {dimension_semantics = [#tpu.dimension_semantics<parallel>], iteration_bounds = array<i64: 4>, scalar_prefetch = 0 : i64, scratch_operands = 0 : i64, tpu.core_type = #tpu.core_type<tc>, window_params = [{transform_indices = @transform_0, window_bounds = array<i64: 16, 128>}, {transform_indices = @transform_1, window_bounds = array<i64: 16, 128>}, {pipeline_mode = #tpu.pipeline_mode<synchronous>, transform_indices = @transform_2, window_bounds = array<i64: 128, 128>}, {pipeline_mode = #tpu.pipeline_mode<synchronous>, transform_indices = @transform_3, window_bounds = array<i64: 1, 128>}, {pipeline_mode = #tpu.pipeline_mode<synchronous>, transform_indices = @transform_4, window_bounds = array<i64: 128, 128>}, {pipeline_mode = #tpu.pipeline_mode<synchronous>, transform_indices = @transform_5, window_bounds = array<i64: 1, 128>}, {pipeline_mode = #tpu.pipeline_mode<synchronous>, transform_indices = @transform_6, window_bounds = array<i64: 128, 128>}, {pipeline_mode = #tpu.pipeline_mode<synchronous>, transform_indices = @transform_7, window_bounds = array<i64: 1, 128>}, {pipeline_mode = #tpu.pipeline_mode<synchronous>, transform_indices = @transform_8, window_bounds = array<i64: 128, 128>}, {pipeline_mode = #tpu.pipeline_mode<synchronous>, transform_indices = @transform_9, window_bounds = array<i64: 1, 128>}, {pipeline_mode = #tpu.pipeline_mode<synchronous>, transform_indices = @transform_10, window_bounds = array<i64: 128, 128>}, {pipeline_mode = #tpu.pipeline_mode<synchronous>, transform_indices = @transform_11, window_bounds = array<i64: 1, 128>}, {transform_indices = @transform_12, window_bounds = array<i64: 16, 128>}, {transform_indices = @transform_13, window_bounds = array<i64: 16, 128>}, {transform_indices = @transform_14, window_bounds = array<i64: 16, 128>}]} {
    %c0 = arith.constant 0 : index
    %c0_0 = arith.constant 0 : index
    %0 = vector.load %arg1[%c0, %c0_0] : memref<16x128xf32, #tpu.memory_space<vmem>>, vector<16x128xf32>
    %c0_1 = arith.constant 0 : index
    %c0_2 = arith.constant 0 : index
    %1 = vector.load %arg3[%c0_1, %c0_2] : memref<128x128xf32, #tpu.memory_space<vmem>>, vector<128x128xf32>
    %cst = arith.constant dense<0.000000e+00> : vector<16x128xf32>
    %2 = tpu.matmul %0, %1, %cst {dimension_numbers = #tpu.dot_dimension_numbers<[1], [0], [0], [1], [0, 0, 1, 1], [], []>} : vector<16x128xf32>, vector<128x128xf32>, vector<16x128xf32> -> vector<16x128xf32>
    %c0_3 = arith.constant 0 : index
    %c0_4 = arith.constant 0 : index
    %3 = vector.load %arg4[%c0_3, %c0_4] : memref<1x128xf32, #tpu.memory_space<vmem>>, vector<1x128xf32>
    %4 = vector.broadcast %3 : vector<1x128xf32> to vector<16x128xf32>
    %5 = arith.addf %2, %4 : vector<16x128xf32>
    %cst_5 = arith.constant 2.000000e-01 : f32
    %6 = vector.broadcast %cst_5 : f32 to vector<16x128xf32>
    %7 = arith.mulf %6, %5 : vector<16x128xf32>
    %8 = arith.maximumf %5, %7 : vector<16x128xf32>
    %c0_6 = arith.constant 0 : index
    %c0_7 = arith.constant 0 : index
    %9 = vector.load %arg5[%c0_6, %c0_7] : memref<128x128xf32, #tpu.memory_space<vmem>>, vector<128x128xf32>
    %cst_8 = arith.constant dense<0.000000e+00> : vector<16x128xf32>
    %10 = tpu.matmul %8, %9, %cst_8 {dimension_numbers = #tpu.dot_dimension_numbers<[1], [0], [0], [1], [0, 0, 1, 1], [], []>} : vector<16x128xf32>, vector<128x128xf32>, vector<16x128xf32> -> vector<16x128xf32>
    %c0_9 = arith.constant 0 : index
    %c0_10 = arith.constant 0 : index
    %11 = vector.load %arg6[%c0_9, %c0_10] : memref<1x128xf32, #tpu.memory_space<vmem>>, vector<1x128xf32>
    %12 = vector.broadcast %11 : vector<1x128xf32> to vector<16x128xf32>
    %13 = arith.addf %10, %12 : vector<16x128xf32>
    %c0_11 = arith.constant 0 : index
    %c0_12 = arith.constant 0 : index
    %14 = vector.load %arg7[%c0_11, %c0_12] : memref<128x128xf32, #tpu.memory_space<vmem>>, vector<128x128xf32>
    %cst_13 = arith.constant dense<0.000000e+00> : vector<16x128xf32>
    %15 = tpu.matmul %8, %14, %cst_13 {dimension_numbers = #tpu.dot_dimension_numbers<[1], [0], [0], [1], [0, 0, 1, 1], [], []>} : vector<16x128xf32>, vector<128x128xf32>, vector<16x128xf32> -> vector<16x128xf32>
    %c0_14 = arith.constant 0 : index
    %c0_15 = arith.constant 0 : index
    %16 = vector.load %arg8[%c0_14, %c0_15] : memref<1x128xf32, #tpu.memory_space<vmem>>, vector<1x128xf32>
    %17 = vector.broadcast %16 : vector<1x128xf32> to vector<16x128xf32>
    %18 = arith.addf %15, %17 : vector<16x128xf32>
    %cst_16 = arith.constant 5.000000e-01 : f32
    %19 = vector.broadcast %cst_16 : f32 to vector<16x128xf32>
    %20 = arith.mulf %19, %18 : vector<16x128xf32>
    %21 = math.exp %20 : vector<16x128xf32>
    %c0_17 = arith.constant 0 : index
    %c0_18 = arith.constant 0 : index
    %22 = vector.load %arg2[%c0_17, %c0_18] : memref<16x128xf32, #tpu.memory_space<vmem>>, vector<16x128xf32>
    %23 = arith.mulf %21, %22 : vector<16x128xf32>
    %24 = arith.addf %13, %23 : vector<16x128xf32>
    %c0_19 = arith.constant 0 : index
    %c0_20 = arith.constant 0 : index
    %25 = vector.load %arg9[%c0_19, %c0_20] : memref<128x128xf32, #tpu.memory_space<vmem>>, vector<128x128xf32>
    %cst_21 = arith.constant dense<0.000000e+00> : vector<16x128xf32>
    %26 = tpu.matmul %24, %25, %cst_21 {dimension_numbers = #tpu.dot_dimension_numbers<[1], [0], [0], [1], [0, 0, 1, 1], [], []>} : vector<16x128xf32>, vector<128x128xf32>, vector<16x128xf32> -> vector<16x128xf32>
    %c0_22 = arith.constant 0 : index
    %c0_23 = arith.constant 0 : index
    %27 = vector.load %arg10[%c0_22, %c0_23] : memref<1x128xf32, #tpu.memory_space<vmem>>, vector<1x128xf32>
    %28 = vector.broadcast %27 : vector<1x128xf32> to vector<16x128xf32>
    %29 = arith.addf %26, %28 : vector<16x128xf32>
    %cst_24 = arith.constant 0.000000e+00 : f32
    %30 = vector.broadcast %cst_24 : f32 to vector<16x128xf32>
    %31 = arith.maximumf %29, %30 : vector<16x128xf32>
    %c0_25 = arith.constant 0 : index
    %c0_26 = arith.constant 0 : index
    %32 = vector.load %arg11[%c0_25, %c0_26] : memref<128x128xf32, #tpu.memory_space<vmem>>, vector<128x128xf32>
    %cst_27 = arith.constant dense<0.000000e+00> : vector<16x128xf32>
    %33 = tpu.matmul %31, %32, %cst_27 {dimension_numbers = #tpu.dot_dimension_numbers<[1], [0], [0], [1], [0, 0, 1, 1], [], []>} : vector<16x128xf32>, vector<128x128xf32>, vector<16x128xf32> -> vector<16x128xf32>
    %c0_28 = arith.constant 0 : index
    %c0_29 = arith.constant 0 : index
    %34 = vector.load %arg12[%c0_28, %c0_29] : memref<1x128xf32, #tpu.memory_space<vmem>>, vector<1x128xf32>
    %35 = vector.broadcast %34 : vector<1x128xf32> to vector<16x128xf32>
    %36 = arith.addf %33, %35 : vector<16x128xf32>
    %37 = math.tanh %36 : vector<16x128xf32>
    %c0_30 = arith.constant 0 : index
    %c0_31 = arith.constant 0 : index
    %38 = vector.load %arg13[%c0_30, %c0_31] : memref<16x128xf32, #tpu.memory_space<vmem>>, vector<16x128xf32>
    tpu.vector_store %arg13[%c0_30, %c0_31], %37 {strides = array<i32>} : memref<16x128xf32, #tpu.memory_space<vmem>>, vector<16x128xf32>,
    %c0_32 = arith.constant 0 : index
    %c0_33 = arith.constant 0 : index
    %39 = vector.load %arg14[%c0_32, %c0_33] : memref<16x128xf32, #tpu.memory_space<vmem>>, vector<16x128xf32>
    tpu.vector_store %arg14[%c0_32, %c0_33], %13 {strides = array<i32>} : memref<16x128xf32, #tpu.memory_space<vmem>>, vector<16x128xf32>,
    %c0_34 = arith.constant 0 : index
    %c0_35 = arith.constant 0 : index
    %40 = vector.load %arg15[%c0_34, %c0_35] : memref<16x128xf32, #tpu.memory_space<vmem>>, vector<16x128xf32>
    tpu.vector_store %arg15[%c0_34, %c0_35], %18 {strides = array<i32>} : memref<16x128xf32, #tpu.memory_space<vmem>>, vector<16x128xf32>,
    return
  }
  func.func @transform_0(%arg0: i32) -> (i32, i32) {
    %c0_i32 = arith.constant 0 : i32
    %c0_i32_0 = arith.constant 0 : i32
    return %arg0, %c0_i32 : i32, i32
  }
  func.func @transform_1(%arg0: i32) -> (i32, i32) {
    %c0_i32 = arith.constant 0 : i32
    %c0_i32_0 = arith.constant 0 : i32
    return %arg0, %c0_i32 : i32, i32
  }
  func.func @transform_2(%arg0: i32) -> (i32, i32) {
    %c0_i32 = arith.constant 0 : i32
    %c0_i32_0 = arith.constant 0 : i32
    %c0_i32_1 = arith.constant 0 : i32
    return %c0_i32, %c0_i32_0 : i32, i32
  }
  func.func @transform_3(%arg0: i32) -> (i32, i32) {
    %c0_i32 = arith.constant 0 : i32
    %c0_i32_0 = arith.constant 0 : i32
    %c0_i32_1 = arith.constant 0 : i32
    return %c0_i32, %c0_i32_0 : i32, i32
  }
  func.func @transform_4(%arg0: i32) -> (i32, i32) {
    %c0_i32 = arith.constant 0 : i32
    %c0_i32_0 = arith.constant 0 : i32
    %c0_i32_1 = arith.constant 0 : i32
    return %c0_i32, %c0_i32_0 : i32, i32
  }
  func.func @transform_5(%arg0: i32) -> (i32, i32) {
    %c0_i32 = arith.constant 0 : i32
    %c0_i32_0 = arith.constant 0 : i32
    %c0_i32_1 = arith.constant 0 : i32
    return %c0_i32, %c0_i32_0 : i32, i32
  }
  func.func @transform_6(%arg0: i32) -> (i32, i32) {
    %c0_i32 = arith.constant 0 : i32
    %c0_i32_0 = arith.constant 0 : i32
    %c0_i32_1 = arith.constant 0 : i32
    return %c0_i32, %c0_i32_0 : i32, i32
  }
  func.func @transform_7(%arg0: i32) -> (i32, i32) {
    %c0_i32 = arith.constant 0 : i32
    %c0_i32_0 = arith.constant 0 : i32
    %c0_i32_1 = arith.constant 0 : i32
    return %c0_i32, %c0_i32_0 : i32, i32
  }
  func.func @transform_8(%arg0: i32) -> (i32, i32) {
    %c0_i32 = arith.constant 0 : i32
    %c0_i32_0 = arith.constant 0 : i32
    %c0_i32_1 = arith.constant 0 : i32
    return %c0_i32, %c0_i32_0 : i32, i32
  }
  func.func @transform_9(%arg0: i32) -> (i32, i32) {
    %c0_i32 = arith.constant 0 : i32
    %c0_i32_0 = arith.constant 0 : i32
    %c0_i32_1 = arith.constant 0 : i32
    return %c0_i32, %c0_i32_0 : i32, i32
  }
  func.func @transform_10(%arg0: i32) -> (i32, i32) {
    %c0_i32 = arith.constant 0 : i32
    %c0_i32_0 = arith.constant 0 : i32
    %c0_i32_1 = arith.constant 0 : i32
    return %c0_i32, %c0_i32_0 : i32, i32
  }
  func.func @transform_11(%arg0: i32) -> (i32, i32) {
    %c0_i32 = arith.constant 0 : i32
    %c0_i32_0 = arith.constant 0 : i32
    %c0_i32_1 = arith.constant 0 : i32
    return %c0_i32, %c0_i32_0 : i32, i32
  }
  func.func @transform_12(%arg0: i32) -> (i32, i32) {
    %c0_i32 = arith.constant 0 : i32
    %c0_i32_0 = arith.constant 0 : i32
    return %arg0, %c0_i32 : i32, i32
  }
  func.func @transform_13(%arg0: i32) -> (i32, i32) {
    %c0_i32 = arith.constant 0 : i32
    %c0_i32_0 = arith.constant 0 : i32
    return %arg0, %c0_i32 : i32, i32
  }
  func.func @transform_14(%arg0: i32) -> (i32, i32) {
    %c0_i32 = arith.constant 0 : i32
    %c0_i32_0 = arith.constant 0 : i32
    return %arg0, %c0_i32 : i32, i32
  }
}

</mosaic_0001>

<bundles_post_ra>
// kernel: generative_replay_forward.1
= control target key start
LH: loop header
LB: loop body
LE: loop exit
PB: predicated region body
PF: predicated region fallthrough
CT: control target
= control target key end

     0   :  { %s1720_s29 = smov 0   ;;  %s2012_s0 = inlined_call_operand.vmem [shape: f32[64,128], index: 0, kind: input, shape index: {}]   ;;  %s2013_s1 = inlined_call_operand.vmem [shape: f32[64,128], index: 1, kind: input, shape index: {}]   ;;  %s2014_s2 = inlined_call_operand.vmem [shape: f32[128,128], index: 2, kind: input, shape index: {}]   ;;  %s2015_s3 = inlined_call_operand.vmem [shape: f32[1,128], index: 3, kind: input, shape index: {}]   ;;  %s2016_s4 = inlined_call_operand.vmem [shape: f32[128,128], index: 4, kind: input, shape index: {}]   ;;  %s2017_s5 = inlined_call_operand.vmem [shape: f32[1,128], index: 5, kind: input, shape index: {}]   ;;  %s2018_s6 = inlined_call_operand.vmem [shape: f32[128,128], index: 6, kind: input, shape index: {}]   ;;  %s2019_s7 = inlined_call_operand.vmem [shape: f32[1,128], index: 7, kind: input, shape index: {}]   ;;  %s2020_s8 = inlined_call_operand.vmem [shape: f32[128,128], index: 8, kind: input, shape index: {}]   ;;  %s2021_s9 = inlined_call_operand.vmem [shape: f32[1,128], index: 9, kind: input, shape index: {}]   ;;  %s2022_s10 = inlined_call_operand.vmem [shape: f32[128,128], index: 10, kind: input, shape index: {}]   ;;  %s2023_s11 = inlined_call_operand.vmem [shape: f32[1,128], index: 11, kind: input, shape index: {}]   ;;  %s2024_s12 = inlined_call_operand.vmem [shape: f32[64,128], index: 12, kind: output, shape index: {0}]   ;;  %s2025_s13 = inlined_call_operand.vmem [shape: f32[64,128], index: 13, kind: output, shape index: {1}]   ;;  %s2026_s14 = inlined_call_operand.vmem [shape: f32[64,128], index: 14, kind: output, shape index: {2}]  }
   0x1 LB: > { %s1174_s30 = sadd.s32 4294967295, %s1643_s29   ;;  %p1178_p0 = scmp.ge.s32.totalorder %s1643_s29, 1  ;;  %s1643_s29 = sphi %s1720_s29, %s25_s29  }
   0x2   : > { %p429_p1 = scmp.lt.s32.totalorder %s1643_s29, 5 }
   0x4   : > { %p430_p2 = pnand %p1178_p0, %p429_p1 }
   0x5   : > { %v522_v0 = vld [vmem:[%s2014_s2] sm:$0xff] (!%p430_p2)  ;;  %v523_v1 = vld [vmem:[%s2014_s2 + $0x8] sm:$0xff] (!%p430_p2)  ;;  %v524_v2 = vld [vmem:[%s2014_s2 + $0x10] sm:$0xff] (!%p430_p2)  ;;  %s1179_s21 = sshll.u32 (!%p430_p2), %s1174_s30, 1 }
   0x6   : > { %433 = sbr.rel (%p430_p2) target bundleno = 941 (0x3ad), region = 68  ;;  %v1461_v3 = vpack.c.bf16 (!%p430_p2), %v523_v1, %v522_v0  ;;  %v525_v4 = vld [vmem:[%s2014_s2 + $0x18] sm:$0xff] (!%p430_p2)  ;;  %p491_p3 = scmp.lt.s32.totalorder (!%p430_p2), %s1179_s21, 7  ;;  %v526_v6 = vld [vmem:[%s2014_s2 + $0x20] sm:$0xff] (!%p430_p2)  ;;  %v527_v7 = vld [vmem:[%s2014_s2 + $0x28] sm:$0xff] (!%p430_p2) }
   0x7   : > { %v1465_v5 = vpack.c.bf16 (!%p430_p2), %v525_v4, %v524_v2  ;;  %v1469_v8 = vpack.c.bf16 (!%p430_p2), %v527_v7, %v526_v6  ;;  %v624_v9 = vld [vmem:[%s2016_s4] sm:$0xff] (!%p430_p2)  ;;  %v625_v10 = vld [vmem:[%s2016_s4 + $0x8] sm:$0xff] (!%p430_p2)  ;;  %v528_v11 = vld [vmem:[%s2014_s2 + $0x30] sm:$0xff] (!%p430_p2) }
   0x8   : > { %1462 = vmatprep.subr.bf16.mxu0 (!%p430_p2), %v1461_v3  ;;  %v529_v12 = vld [vmem:[%s2014_s2 + $0x38] sm:$0xff] (!%p430_p2)  ;;  %v1493_v13 = vpack.c.bf16 (!%p430_p2), %v625_v10, %v624_v9  ;;  %v626_v14 = vld [vmem:[%s2016_s4 + $0x10] sm:$0xff] (!%p430_p2)  ;;  %v628_v18 = vld [vmem:[%s2016_s4 + $0x20] sm:$0xff] (!%p430_p2) }
   0x9   : > { %1464 = vmatpush3.bf16.msra.mxu0 (!%p430_p2), %v1461_v3  ;;  %v627_v16 = vld [vmem:[%s2016_s4 + $0x18] sm:$0xff] (!%p430_p2)  ;;  %v1473_v19 = vpack.c.bf16 (!%p430_p2), %v529_v12, %v528_v11  ;;  %v629_v20 = vld [vmem:[%s2016_s4 + $0x28] sm:$0xff] (!%p430_p2)  ;;  %v530_v21 = vld [vmem:[%s2014_s2 + $0x40] sm:$0xff] (!%p430_p2) }
   0xa   : > { %1466 = vmatprep.subr.bf16.mxu0 (!%p430_p2), %v1465_v5  ;;  %v1497_v17 = vpack.c.bf16 (!%p430_p2), %v627_v16, %v626_v14  ;;  %1494 = vmatprep.subr.bf16.mxu1 (!%p430_p2), %v1493_v13  ;;  %v531_v22 = vld [vmem:[%s2014_s2 + $0x48] sm:$0xff] (!%p430_p2)  ;;  %v1501_v23 = vpack.c.bf16 (!%p430_p2), %v629_v20, %v628_v18  ;;  %v630_v24 = vld [vmem:[%s2016_s4 + $0x30] sm:$0xff] (!%p430_p2)  ;;  %v631_v25 = vld [vmem:[%s2016_s4 + $0x38] sm:$0xff] (!%p430_p2) }
   0xb   : > { %1496 = vmatpush3.bf16.msra.mxu1 (!%p430_p2), %v1493_v13  ;;  %v1477_v26 = vpack.c.bf16 (!%p430_p2), %v531_v22, %v530_v21  ;;  %v532_v27 = vld [vmem:[%s2014_s2 + $0x50] sm:$0xff] (!%p430_p2)  ;;  %v533_v28 = vld [vmem:[%s2014_s2 + $0x58] sm:$0xff] (!%p430_p2)  ;;  %v1505_v29 = vpack.c.bf16 (!%p430_p2), %v631_v25, %v630_v24  ;;  %v632_v30 = vld [vmem:[%s2016_s4 + $0x40] sm:$0xff] (!%p430_p2) }
   0xc   : > { %1498 = vmatprep.subr.bf16.mxu1 (!%p430_p2), %v1497_v17  ;;  %v633_v31 = vld [vmem:[%s2016_s4 + $0x48] sm:$0xff] (!%p430_p2)  ;;  %v1481_v32 = vpack.c.bf16 (!%p430_p2), %v533_v28, %v532_v27  ;;  %v534_v33 = vld [vmem:[%s2014_s2 + $0x60] sm:$0xff] (!%p430_p2)  ;;  %v634_v36 = vld [vmem:[%s2016_s4 + $0x50] sm:$0xff] (!%p430_p2) }
   0xd   : > { %s2028_s21 = smov (!%p491_p3, %s1179_s21), 7  ;;  %1468 = vmatpush3.bf16.msra.mxu0 %v1465_v5  ;;  %v535_v34 = vld [vmem:[%s2014_s2 + $0x68] sm:$0xff]  ;;  %v1509_v35 = vpack.c.bf16 %v633_v31, %v632_v30  ;;  %v635_v37 = vld [vmem:[%s2016_s4 + $0x58] sm:$0xff]  ;;  %v536_v39 = vld [vmem:[%s2014_s2 + $0x70] sm:$0xff] }
   0xe   : > { %s1746_s28 = sshll.u32 %s2028_s21, 3  ;;  %1470 = vmatprep.subr.bf16.mxu0 %v1469_v8  ;;  %v1485_v38 = vpack.c.bf16 %v535_v34, %v534_v33  ;;  %v537_v40 = vld [vmem:[%s2014_s2 + $0x78] sm:$0xff]  ;;  %v1513_v41 = vpack.c.bf16 %v635_v37, %v634_v36  ;;  %v722_v43 = vld [vmem:[%s2018_s6] sm:$0xff]  ;;  %v723_v44 = vld [vmem:[%s2018_s6 + $0x8] sm:$0xff] }
   0xf   : > { %s1764_s24 = scalar_lea.vmem %s2012_s0, %s1746_s28  ;;  %1500 = vmatpush3.bf16.msra.mxu1 %v1497_v17  ;;  %v1489_v42 = vpack.c.bf16 %v537_v40, %v536_v39  ;;  %v1525_v45 = vpack.c.bf16 %v723_v44, %v722_v43  ;;  %v724_v46 = vld [vmem:[%s2018_s6 + $0x10] sm:$0xff]  ;;  %v725_v47 = vld [vmem:[%s2018_s6 + $0x18] sm:$0xff]  ;;  %v726_v50 = vld [vmem:[%s2018_s6 + $0x20] sm:$0xff]  ;;  %s512_s18 = scalar_lea.vmem %s2025_s13, %s1746_s28 }
  0x10   : > { %v520_v15 = vld [vmem:[%s1764_s24] sm:$0xff]  ;;  %1502 = vmatprep.subr.bf16.mxu1 %v1501_v23  ;;  %v521_v48 = vld [vmem:[%s1764_s24 + $0x8] sm:$0xff]  ;;  %v1529_v49 = vpack.c.bf16 %v725_v47, %v724_v46  ;;  %v728_v53 = vld [vmem:[%s2018_s6 + $0x30] sm:$0xff]  ;;  %s518_s22 = scalar_lea.vmem %s2026_s14, %s1746_s28  ;;  %s500_s21 = scalar_lea.vmem %s2013_s1, %s1746_s28 }
  0x11   : > { %1318 = vmatprep.mubr.f32.mxu0 %v520_v15  ;;  %1472 = vmatpush3.bf16.msra.mxu0 %v1469_v8  ;;  %v727_v51 = vld [vmem:[%s2018_s6 + $0x28] sm:$0xff]  ;;  %v729_v54 = vld [vmem:[%s2018_s6 + $0x38] sm:$0xff]  ;;  %v730_v56 = vld [vmem:[%s2018_s6 + $0x40] sm:$0xff] }
  0x12   : > { %1474 = vmatprep.subr.bf16.mxu0 %v1473_v19  ;;  %v1533_v52 = vpack.c.bf16 %v727_v51, %v726_v50  ;;  %v1537_v55 = vpack.c.bf16 %v729_v54, %v728_v53  ;;  %v731_v57 = vld [vmem:[%s2018_s6 + $0x48] sm:$0xff]  ;;  %v732_v59 = vld [vmem:[%s2018_s6 + $0x50] sm:$0xff]  ;;  %v733_v60 = vld [vmem:[%s2018_s6 + $0x58] sm:$0xff] }
  0x13   : > { %1504 = vmatpush3.bf16.msra.mxu1 %v1501_v23  ;;  %v1541_v58 = vpack.c.bf16 %v731_v57, %v730_v56  ;;  %v1545_v61 = vpack.c.bf16 %v733_v60, %v732_v59  ;;  %v636_v62 = vld [vmem:[%s2016_s4 + $0x60] sm:$0xff]  ;;  %v637_v63 = vld [vmem:[%s2016_s4 + $0x68] sm:$0xff]  ;;  %v638_v4 = vld [vmem:[%s2016_s4 + $0x70] sm:$0xff] }
  0x14   : > { %1506 = vmatprep.subr.bf16.mxu1 %v1505_v29  ;;  %v734_v0 = vld [vmem:[%s2018_s6 + $0x60] sm:$0xff]  ;;  %v1517_v1 = vpack.c.bf16 %v637_v63, %v636_v62  ;;  %v735_v2 = vld [vmem:[%s2018_s6 + $0x68] sm:$0xff]  ;;  %v639_v5 = vld [vmem:[%s2016_s4 + $0x78] sm:$0xff] }
  0x15   : > { %1476 = vmatpush3.bf16.msra.mxu0 %v1473_v19  ;;  %v1549_v3 = vpack.c.bf16 %v735_v2, %v734_v0  ;;  %v736_v6 = vld [vmem:[%s2018_s6 + $0x70] sm:$0xff]  ;;  %v1521_v7 = vpack.c.bf16 %v639_v5, %v638_v4  ;;  %v737_v8 = vld [vmem:[%s2018_s6 + $0x78] sm:$0xff]  ;;  %v832_v10 = vld [vmem:[%s2020_s8] sm:$0xff] }
  0x16   : > { %1478 = vmatprep.subr.bf16.mxu0 %v1477_v26  ;;  %v1553_v9 = vpack.c.bf16 %v737_v8, %v736_v6  ;;  %v833_v11 = vld [vmem:[%s2020_s8 + $0x8] sm:$0xff]  ;;  %v1189_v13 = vld [vmem:[%s2015_s3] ss:$0 sm:$0xff]  ;;  %v834_v20 = vld [vmem:[%s2020_s8 + $0x10] sm:$0xff] }
  0x17   : > { %1508 = vmatpush3.bf16.msra.mxu1 %v1505_v29  ;;  %v1557_v12 = vpack.c.bf16 %v833_v11, %v832_v10  ;;  %v835_v21 = vld [vmem:[%s2020_s8 + $0x18] sm:$0xff]  ;;  %v836_v25 = vld [vmem:[%s2020_s8 + $0x20] sm:$0xff]  ;;  %v838_v28 = vld [vmem:[%s2020_s8 + $0x30] sm:$0xff] }
  0x18   : > { %1510 = vmatprep.subr.bf16.mxu1 %v1509_v35  ;;  %v1561_v24 = vpack.c.bf16 %v835_v21, %v834_v20  ;;  %v839_v29 = vld [vmem:[%s2020_s8 + $0x38] sm:$0xff]  ;;  %v840_v31 = vld [vmem:[%s2020_s8 + $0x40] sm:$0xff]  ;;  %v842_v34 = vld [vmem:[%s2020_s8 + $0x50] sm:$0xff] }
  0x19   : > { %1480 = vmatpush3.bf16.msra.mxu0 %v1477_v26  ;;  %v837_v26 = vld [vmem:[%s2020_s8 + $0x28] sm:$0xff]  ;;  %v1569_v30 = vpack.c.bf16 %v839_v29, %v838_v28  ;;  %v844_v36 = vld [vmem:[%s2020_s8 + $0x60] sm:$0xff]  ;;  %v846_v40 = vld [vmem:[%s2020_s8 + $0x70] sm:$0xff] }
  0x1a   : > { %1482 = vmatprep.subr.bf16.mxu0 %v1481_v32  ;;  %v1565_v27 = vpack.c.bf16 %v837_v26, %v836_v25  ;;  %v932_v43 = vld [vmem:[%s2022_s10] sm:$0xff]  ;;  %v933_v44 = vld [vmem:[%s2022_s10 + $0x8] sm:$0xff]  ;;  %v935_v47 = vld [vmem:[%s2022_s10 + $0x18] sm:$0xff] }
  0x1b   : > { %1512 = vmatpush3.bf16.msra.mxu1 %v1509_v35  ;;  %v843_v35 = vld [vmem:[%s2020_s8 + $0x58] sm:$0xff]  ;;  %v1589_v46 = vpack.c.bf16 %v933_v44, %v932_v43  ;;  %v937_v50 = vld [vmem:[%s2022_s10 + $0x28] sm:$0xff]  ;;  %v1191_v0 = vld [vmem:[%s2019_s7] ss:$0 sm:$0xff] }
  0x1c   : > { %1514 = vmatprep.subr.bf16.mxu1 %v1513_v41  ;;  %v1577_v37 = vpack.c.bf16 %v843_v35, %v842_v34  ;;  %v939_v53 = vld [vmem:[%s2022_s10 + $0x38] sm:$0xff]  ;;  %v941_v56 = vld [vmem:[%s2022_s10 + $0x48] sm:$0xff]  ;;  %v1192_v25 = vld [vmem:[%s2021_s9] ss:$0 sm:$0xff] }
  0x1d   : > { %1484 = vmatpush3.bf16.msra.mxu0 %v1481_v32  ;;  %v841_v32 = vld [vmem:[%s2020_s8 + $0x48] sm:$0xff]  ;;  %v943_v59 = vld [vmem:[%s2022_s10 + $0x58] sm:$0xff] }
  0x1e   : > { %1486 = vmatprep.subr.bf16.mxu0 %v1485_v38  ;;  %v1573_v33 = vpack.c.bf16 %v841_v32, %v840_v31  ;;  %v945_v62 = vld [vmem:[%s2022_s10 + $0x68] sm:$0xff]  ;;  %v1193_v32 = vld [vmem:[%s2023_s11] ss:$0 sm:$0xff] }
  0x1f   : > { %1516 = vmatpush3.bf16.msra.mxu1 %v1513_v41  ;;  %v847_v41 = vld [vmem:[%s2020_s8 + $0x78] sm:$0xff] }
  0x20   : > { %1518 = vmatprep.subr.bf16.mxu1 %v1517_v1 }
  0x21   : > { %1488 = vmatpush3.bf16.msra.mxu0 %v1485_v38  ;;  %v845_v38 = vld [vmem:[%s2020_s8 + $0x68] sm:$0xff] }
  0x22   : > { %1490 = vmatprep.subr.bf16.mxu0 %v1489_v42  ;;  %v1581_v39 = vpack.c.bf16 %v845_v38, %v844_v36 }
  0x23   : > { %1520 = vmatpush3.bf16.msra.mxu1 %v1517_v1  ;;  %v1190_v1 = vld [vmem:[%s2017_s5] ss:$0 sm:$0xff] }
  0x24   : > { %1522 = vmatprep.subr.bf16.mxu1 %v1521_v7 }
  0x25   : > { %1492 = vmatpush3.bf16.msra.mxu0 %v1489_v42  ;;  %v1585_v42 = vpack.c.bf16 %v847_v41, %v846_v40 }
  0x26   : > { %1526 = vmatprep.subr.bf16.mxu0 %v1525_v45 }
  0x27   : > { %1524 = vmatpush3.bf16.msra.mxu1 %v1521_v7 }
  0x28   : > { %1319 = vmatmul.mubr.f32.vlgmr.msra.gmra.mrb[0].mxu0 %v521_v48  ;;  %1558 = vmatprep.subr.bf16.mxu1 %v1557_v12 }
  0x29   : > { %1528 = vmatpush3.bf16.msra.mxu0 %v1525_v45  ;;  %v934_v45 = vld [vmem:[%s2022_s10 + $0x10] sm:$0xff] }
  0x2a   : > { %1530 = vmatprep.subr.bf16.mxu0 %v1529_v49  ;;  %v1593_v48 = vpack.c.bf16 %v935_v47, %v934_v45 }
  0x2d   : > { %1532 = vmatpush3.bf16.msra.mxu0 %v1529_v49  ;;  %v936_v49 = vld [vmem:[%s2022_s10 + $0x20] sm:$0xff] }
  0x2e   : > { %1534 = vmatprep.subr.bf16.mxu0 %v1533_v52  ;;  %v1597_v51 = vpack.c.bf16 %v937_v50, %v936_v49 }
  0x31   : > { %1536 = vmatpush3.bf16.msra.mxu0 %v1533_v52  ;;  %v938_v52 = vld [vmem:[%s2022_s10 + $0x30] sm:$0xff] }
  0x32   : > { %1538 = vmatprep.subr.bf16.mxu0 %v1537_v55  ;;  %v1601_v54 = vpack.c.bf16 %v939_v53, %v938_v52 }
  0x35   : > { %1540 = vmatpush3.bf16.msra.mxu0 %v1537_v55  ;;  %v940_v55 = vld [vmem:[%s2022_s10 + $0x40] sm:$0xff] }
  0x36   : > { %1542 = vmatprep.subr.bf16.mxu0 %v1541_v58  ;;  %v1605_v57 = vpack.c.bf16 %v941_v56, %v940_v55 }
  0x39   : > { %1544 = vmatpush3.bf16.msra.mxu0 %v1541_v58  ;;  %v942_v58 = vld [vmem:[%s2022_s10 + $0x50] sm:$0xff] }
  0x3a   : > { %1546 = vmatprep.subr.bf16.mxu0 %v1545_v61  ;;  %v1609_v60 = vpack.c.bf16 %v943_v59, %v942_v58 }
  0x3d   : > { %1548 = vmatpush3.bf16.msra.mxu0 %v1545_v61  ;;  %v944_v61 = vld [vmem:[%s2022_s10 + $0x60] sm:$0xff] }
  0x3e   : > { %1550 = vmatprep.subr.bf16.mxu0 %v1549_v3  ;;  %v1613_v63 = vpack.c.bf16 %v945_v62, %v944_v61 }
  0x41   : > { %1552 = vmatpush3.bf16.msra.mxu0 %v1549_v3 }
  0x42   : > { %1554 = vmatprep.subr.bf16.mxu0 %v1553_v9 }
  0x45   : > { %1556 = vmatpush3.bf16.msra.mxu0 %v1553_v9 }
  0x46   : > { %1590 = vmatprep.subr.bf16.mxu0 %v1589_v46 }
  0xfb   : > { %v1320_v14 = vpop.f32.mrb[0].mxu0 }
  0xfc   : > { %v617_v15 = vadd.f32 %v1320_v14, %v1189_v13  ;;  %v611_v16 = vpop.f32.mrb[1].mxu0  ;;  %v827_v14 = vld [vmem:[%s500_s21 + $0x8] sm:$0xff] }
  0xfd   : > { %v612_v17 = vadd.f32 %v1189_v13, %v611_v16 }
  0xfe   : > { %v621_v18 = vmul.f32 0.2, %v617_v15 }
  0xff   : > { %v620_v19 = vmul.f32 0.2, %v612_v17 }
 0x100   : > { %v623_v23 = vmax.f32 %v617_v15, %v621_v18  ;;  %v826_v15 = vld [vmem:[%s500_s21] sm:$0xff] }
 0x101   : > { %v622_v22 = vmax.f32 %v612_v17, %v620_v19 }
 0x103   : > { %1353 = vmatprep.mubr.f32.mxu1 %v622_v22  ;;  %1388 = vmatprep.mubr.f32.mxu0 %v622_v22  ;;  %v946_v22 = vld [vmem:[%s2022_s10 + $0x70] sm:$0xff] }
 0x104   : > { %1354 = vmatmul.mubr.f32.vlgmr.msra.gmra.mrb[0].mxu1 %v623_v23  ;;  %1389 = vmatmul.mubr.f32.vlgmr.msra.gmra.mrb[2].mxu0 %v623_v23  ;;  %v947_v23 = vld [vmem:[%s2022_s10 + $0x78] sm:$0xff] }
 0x105   : > { %1560 = vmatpush3.bf16.msra.mxu1 %v1557_v12  ;;  %1592 = vmatpush3.bf16.msra.mxu0 %v1589_v46 }
 0x106   : > { %1562 = vmatprep.subr.bf16.mxu1 %v1561_v24  ;;  %1594 = vmatprep.subr.bf16.mxu0 %v1593_v48 }
 0x109   : > { %1564 = vmatpush3.bf16.msra.mxu1 %v1561_v24  ;;  %1596 = vmatpush3.bf16.msra.mxu0 %v1593_v48  ;;  %v1617_v24 = vpack.c.bf16 %v947_v23, %v946_v22 }
 0x10a   : > { %1566 = vmatprep.subr.bf16.mxu1 %v1565_v27  ;;  %1598 = vmatprep.subr.bf16.mxu0 %v1597_v51 }
 0x10d   : > { %1568 = vmatpush3.bf16.msra.mxu1 %v1565_v27  ;;  %1600 = vmatpush3.bf16.msra.mxu0 %v1597_v51 }
 0x10e   : > { %1570 = vmatprep.subr.bf16.mxu1 %v1569_v30  ;;  %1602 = vmatprep.subr.bf16.mxu0 %v1601_v54 }
 0x111   : > { %1572 = vmatpush3.bf16.msra.mxu1 %v1569_v30  ;;  %1604 = vmatpush3.bf16.msra.mxu0 %v1601_v54 }
 0x112   : > { %1574 = vmatprep.subr.bf16.mxu1 %v1573_v33  ;;  %1606 = vmatprep.subr.bf16.mxu0 %v1605_v57 }
 0x115   : > { %1576 = vmatpush3.bf16.msra.mxu1 %v1573_v33  ;;  %1608 = vmatpush3.bf16.msra.mxu0 %v1605_v57 }
 0x116   : > { %1578 = vmatprep.subr.bf16.mxu1 %v1577_v37  ;;  %1610 = vmatprep.subr.bf16.mxu0 %v1609_v60 }
 0x119   : > { %1580 = vmatpush3.bf16.msra.mxu1 %v1577_v37  ;;  %1612 = vmatpush3.bf16.msra.mxu0 %v1609_v60 }
 0x11a   : > { %1582 = vmatprep.subr.bf16.mxu1 %v1581_v39  ;;  %1614 = vmatprep.subr.bf16.mxu0 %v1613_v63 }
 0x11d   : > { %1584 = vmatpush3.bf16.msra.mxu1 %v1581_v39  ;;  %1616 = vmatpush3.bf16.msra.mxu0 %v1613_v63 }
 0x11e   : > { %1586 = vmatprep.subr.bf16.mxu1 %v1585_v42  ;;  %1618 = vmatprep.subr.bf16.mxu0 %v1617_v24 }
 0x121   : > { %1588 = vmatpush3.bf16.msra.mxu1 %v1585_v42  ;;  %1620 = vmatpush3.bf16.msra.mxu0 %v1617_v24 }
 0x1d7   : > { %v1355_v2 = vpop.f32.mrb[0].mxu1  ;;  %v1390_v3 = vpop.f32.mrb[2].mxu0 }
 0x1d8   : > { %v817_v4 = vadd.f32 %v1390_v3, %v1191_v0  ;;  %v713_v5 = vpop.f32.mrb[1].mxu1  ;;  %v811_v6 = vpop.f32.mrb[3].mxu0  ;;  %v719_v9 = vadd.f32 %v1355_v2, %v1190_v1 }
 0x1d9   : > { %v714_v7 = vadd.f32 %v1190_v1, %v713_v5  ;;  %v812_v8 = vadd.f32 %v1191_v0, %v811_v6 }
 0x1da   : > { %v821_v10 = vmul.f32 0.5, %v817_v4  ;;  %1035 = vst [vmem:[%s512_s18 + $0x8] sm:$0xff] %v719_v9  ;;  %1037 = vst [vmem:[%s518_s22 + $0x8] sm:$0xff] %v817_v4 }
 0x1db   : > { %1034 = vst [vmem:[%s512_s18] sm:$0xff] %v714_v7  ;;  %v820_v11 = vmul.f32 0.5, %v812_v8  ;;  %1036 = vst [vmem:[%s518_s22] sm:$0xff] %v812_v8  ;;  %s506_s22 = scalar_lea.vmem %s2024_s12, %s1746_s28 }
 0x1dc   : > { %v824_v12 = vmul.f32 1.442695, %v821_v10 }
 0x1dd   : > { %v822_v13 = vmul.f32 1.442695, %v820_v11 }
 0x1de   : > { %1629 = vpow2.f32 %v824_v12 }
 0x1df   : > { %1631 = vpow2.f32 %v822_v13 }
 0x1e8   : > { %v1630_v16 = vpop.eup %1629 }
 0x1e9   : > { %v1632_v17 = vpop.eup %1631  ;;  %v829_v18 = vmul.f32 %v1630_v16, %v827_v14 }
 0x1ea   : > { %v828_v19 = vmul.f32 %v1632_v17, %v826_v15 }
 0x1eb   : > { %v831_v20 = vadd.f32 %v829_v18, %v719_v9 }
 0x1ec   : > { %v830_v21 = vadd.f32 %v828_v19, %v714_v7 }
 0x1ee   : > { %1423 = vmatprep.mubr.f32.mxu1 %v830_v21 }
 0x1ef   : > { %1424 = vmatmul.mubr.f32.vlgmr.msra.gmra.mrb[2].mxu1 %v831_v20 }
 0x2c2   : > { %v1425_v26 = vpop.f32.mrb[2].mxu1 }
 0x2c3   : > { %v927_v27 = vadd.f32 %v1425_v26, %v1192_v25  ;;  %v921_v28 = vpop.f32.mrb[3].mxu1 }
 0x2c4   : > { %v922_v29 = vadd.f32 %v1192_v25, %v921_v28 }
 0x2c5   : > { %v931_v31 = vmax.f32 %v927_v27, 0.0 }
 0x2c6   : > { %v930_v30 = vmax.f32 %v922_v29, 0.0 }
 0x2c8   : > { %1458 = vmatprep.mubr.f32.mxu0 %v930_v30 }
 0x2c9   : > { %1459 = vmatmul.mubr.f32.vlgmr.msra.gmra.mrb[4].mxu0 %v931_v31 }
 0x39c   : > { %v1460_v33 = vpop.f32.mrb[4].mxu0 }
 0x39d   : > { %v1027_v34 = vadd.f32 %v1460_v33, %v1193_v32  ;;  %v1021_v35 = vpop.f32.mrb[5].mxu0 }
 0x39e   : > { %v1022_v36 = vadd.f32 %v1193_v32, %v1021_v35 }
 0x3a0   : > { %1633 = vtanh.f32 %v1022_v36 }
 0x3a1   : > { %1635 = vtanh.f32 %v1027_v34 }
 0x3aa   : > { %v1634_v37 = vpop.eup %1633 }
 0x3ab   : > { %v1636_v38 = vpop.eup %1635  ;;  %1032 = vst [vmem:[%s506_s22] sm:$0xff] %v1634_v37 }
 0x3ac   : > { %1033 = vst [vmem:[%s506_s22 + $0x8] sm:$0xff] %v1636_v38 }
 0x3ad PF: > { %s25_s29 = sadd.s32 1, %s1643_s29  }
 0x3ae   : > { %p22_p4 = scmp.ge.s32.totalorder %s25_s29, 6  }
 0x3b0   :  { %24 = sbr.rel (!%p22_p4) target bundleno = 1 (0x1), region = 125 }

</bundles_post_ra>
